<compile_context>
chip_gen: v6e
topology: v6e:2x2x1
jax: 0.10.0
libtpu: 0.0.40
codegen_flags: <defaults>
</compile_context>

<pallas_src>
import functools

import jax
import jax.numpy as jnp
from jax import lax
from jax.experimental import pallas as pl
from jax.experimental.pallas import tpu as pltpu

# Contract the last axes of both operands: q @ k^T without materializing a transpose.
_NT_DIMS = (((1,), (1,)), ((), ()))


def _attention_kernel(x_ref, wqkv_ref, wp_ref, bias_ref, mask_ref, o_ref, *,
                      num_heads, head_dim, batch_per_step, seq_len,
                      pack_factor, approx_recip):
    """One grid step: fused QKV projection, block-diagonal batched SDPA over all
    (head, batch) pairs, fused output projection, lane-dense store."""
    H, D, BB, N = num_heads, head_dim, batch_per_step, seq_len
    HD = H * D
    rows = BB * N                      # token rows handled by this step
    # M = H * rows                     # (head, batch, token) rows in the batched SDPA

    x = x_ref[...]                     # (rows, C), compute dtype (bf16 or f32)
    cdt = x.dtype

    # --- one fused QKV projection (SDPA scale pre-folded into the Q columns) ---
    qkv = jnp.dot(x, wqkv_ref[...], preferred_element_type=jnp.float32)   # (rows, 3*H*D) f32

    # --- stack all (head, batch) pairs along sublanes -> (H*rows, D), row order (h, b, n)
    #     (static 32-lane slices + sublane concat: XLU-side layout work, MXU stays busy) ---
    q_all = jnp.concatenate([qkv[:, 0 * HD + h * D:0 * HD + (h + 1) * D] for h in range(H)], axis=0)
    k_all = jnp.concatenate([qkv[:, 1 * HD + h * D:1 * HD + (h + 1) * D] for h in range(H)], axis=0)
    v_all = jnp.concatenate([qkv[:, 2 * HD + h * D:2 * HD + (h + 1) * D] for h in range(H)], axis=0)

    # --- one block-diagonal masked SDPA over all (head, batch) pairs ---
    s = lax.dot_general(q_all.astype(cdt), k_all.astype(cdt), _NT_DIMS,
                        preferred_element_type=jnp.float32)               # (M, M) f32
    s = s + mask_ref[...]                                                  # off-block -> -1e30
    s = s - jnp.max(s, axis=-1, keepdims=True)                             # in-block row max
    p = jnp.exp(s)                                                         # masked cols underflow to 0
    l = jnp.sum(p, axis=-1, keepdims=True)                                 # (M, 1), in-block row sum

    pv = jnp.dot(p.astype(cdt), v_all.astype(cdt),
                 preferred_element_type=jnp.float32)                       # (M, D) f32
    o_all = pv * pl.reciprocal(l, approx=approx_recip)                     # exact divide on f32 path

    # --- regroup heads into lanes (rows, H*D) and apply ONE fused output projection ---
    o_cat = jnp.concatenate([o_all[h * rows:(h + 1) * rows, :] for h in range(H)], axis=1)
    out = jnp.dot(o_cat.astype(cdt), wp_ref[...], preferred_element_type=jnp.float32)  # (rows, C)
    out = (out + bias_ref[...]).astype(o_ref.dtype)                        # bias added once, f32

    # --- lane-dense store: pack row-chunks side by side so the slab is 128 lanes wide ---
    if pack_factor > 1:
        rpf = rows // pack_factor
        out = jnp.concatenate([out[j * rpf:(j + 1) * rpf, :] for j in range(pack_factor)], axis=1)
    o_ref[...] = out


def attention_pallas(x, w_qkv, w_proj, b_proj, *, num_heads, head_dim,
                     grid_batches=1, compute_dtype=jnp.bfloat16):
    """x: (B, N, C); w_qkv: (C, 3*H*D); w_proj: (H*D, C); b_proj: (C,).

    grid_batches: grid steps along batch (1 = fully fused; B = one batch per step,
    useful to shard across the two TensorCores of a v7x chip).
    compute_dtype: dtype of MXU operands (softmax, accumulation and bias stay fp32).
    """
    B, N, C = x.shape
    H, D = num_heads, head_dim
    HD = H * D
    assert w_qkv.shape == (C, 3 * HD) and w_proj.shape == (HD, C) and b_proj.shape == (C,)
    assert B % grid_batches == 0
    BB = B // grid_batches
    rows = BB * N                      # token rows per grid step
    M = H * rows                       # stacked SDPA rows per grid step
    scale = float(D) ** -0.5

    cdt = jnp.zeros((), compute_dtype if compute_dtype is not None else jnp.bfloat16).dtype
    approx_recip = bool(cdt != jnp.float32)   # exact reciprocal on the fp32 parity path

    # Trace-time weight plumbing (free): fold the SDPA scale into the Q columns of the
    # fused QKV weight; keep QKV fused and lane-dense (C, 3*H*D); cast operands once.
    wqkv = w_qkv.astype(jnp.float32).at[:, :HD].multiply(scale).astype(cdt)
    wp = w_proj.astype(cdt)
    bias = b_proj.reshape(1, C).astype(jnp.float32)

    # Additive block-diagonal mask for the (head, batch)-stacked SDPA (block size N).
    blk = jnp.arange(M, dtype=jnp.int32) // N
    attn_bias = jnp.where(blk[:, None] == blk[None, :], 0.0, -1e30).astype(jnp.float32)

    x_flat = x.reshape(B * N, C).astype(cdt)

    # Lane-dense output packing: C < 128 would force masked stores / half-dense writeback.
    pack_factor = 1
    if C < 128 and 128 % C == 0 and rows % (128 // C) == 0:
        pack_factor = 128 // C
    rpf = rows // pack_factor
    out_rows = (B * N) // pack_factor
    out_cols = pack_factor * C

    kernel = functools.partial(_attention_kernel, num_heads=H, head_dim=D,
                               batch_per_step=BB, seq_len=N,
                               pack_factor=pack_factor, approx_recip=approx_recip)

    out_flat = pl.pallas_call(
        kernel,
        out_shape=jax.ShapeDtypeStruct((out_rows, out_cols), x.dtype),
        grid_spec=pltpu.PrefetchScalarGridSpec(
            num_scalar_prefetch=0,
            grid=(grid_batches,),
            in_specs=[
                pl.BlockSpec((rows, C), lambda g: (g, 0)),       # tokens for this step
                pl.BlockSpec((C, 3 * HD), lambda g: (0, 0)),     # fused QKV weight (resident)
                pl.BlockSpec((HD, C), lambda g: (0, 0)),         # fused out-proj weight (resident)
                pl.BlockSpec((1, C), lambda g: (0, 0)),          # proj bias
                pl.BlockSpec((M, M), lambda g: (0, 0)),          # block-diagonal additive mask
            ],
            out_specs=pl.BlockSpec((rpf, out_cols), lambda g: (g, 0)),  # lane-dense slab
        ),
        compiler_params=pltpu.CompilerParams(dimension_semantics=("parallel",)),
    )(x_flat, wqkv, wp, bias, attn_bias)

    # Undo the lane packing (pure layout plumbing in the wrapper, outside the kernel).
    if pack_factor > 1:
        out = out_flat.reshape(grid_batches, rpf, pack_factor, C)
        out = jnp.swapaxes(out, 1, 2).reshape(B, N, C)
    else:
        out = out_flat.reshape(B, N, C)
    return out

    # TODO(synk): for realistic EfficientMod token counts (N in the hundreds+), tile the
    # token axis with a real grid so BlockSpec double-buffers x/out and the (N, N) scores
    # stay within v7x's smaller VMEM.


def attention_reference(x, w_qkv, w_proj, b_proj, *, num_heads, head_dim):
    """Pure-JAX reference mirroring the PyTorch forward exactly (fp32)."""
    B, N, C = x.shape
    H, D = num_heads, head_dim
    scale = float(D) ** -0.5
    qkv = x @ w_qkv                                                   # (B, N, 3*H*D)
    qkv = qkv.reshape(B, N, 3, H, D).transpose(2, 0, 3, 1, 4)         # (3, B, H, N, D)
    q, k, v = qkv[0], qkv[1], qkv[2]
    attn = (q * scale) @ jnp.swapaxes(k, -2, -1)                      # (B, H, N, N)
    attn = jax.nn.softmax(attn, axis=-1)
    o = attn @ v                                                      # (B, H, N, D)
    o = jnp.swapaxes(o, 1, 2).reshape(B, N, H * D)
    return o @ w_proj + b_proj


if __name__ == "__main__":
    # Module-consistent small shapes: dim=64, num_heads=2 -> head_dim = max(64//2, 32) = 32
    B, N, dim = 2, 16, 64
    num_heads = 2
    head_dim = max(dim // num_heads, 32)
    inner = num_heads * head_dim

    key = jax.random.PRNGKey(0)
    k_x, k_wqkv, k_wp, k_bp = jax.random.split(key, 4)

    x = jax.random.normal(k_x, (B, N, dim), dtype=jnp.float32)
    # deterministic synthetic weights (nn.Linear-like scale); qkv has no bias (qkv_bias=False)
    w_qkv = jax.random.uniform(k_wqkv, (dim, 3 * inner), jnp.float32, -1.0, 1.0) / (dim ** 0.5)
    w_proj = jax.random.uniform(k_wp, (inner, dim), jnp.float32, -1.0, 1.0) / (inner ** 0.5)
    b_proj = jax.random.uniform(k_bp, (dim,), jnp.float32, -1.0, 1.0) / (inner ** 0.5)

    # Keep a parallel batch axis on dual-TensorCore chips (v7x); collapse to one step otherwise.
    try:
        _kind = jax.devices()[0].device_kind.lower()
    except Exception:
        _kind = ""
    gb = B if ("v7" in _kind or "7x" in _kind) else 1

    with jax.default_matmul_precision("highest"):
        ref = attention_reference(x, w_qkv, w_proj, b_proj,
                                  num_heads=num_heads, head_dim=head_dim)
        ref = jax.block_until_ready(ref)

    # fp32-operand path (tight parity with the fp32 PyTorch module; exact reciprocal).
    out_f32 = attention_pallas(x, w_qkv, w_proj, b_proj,
                               num_heads=num_heads, head_dim=head_dim,
                               grid_batches=gb, compute_dtype=jnp.float32)
    out_f32 = jax.block_until_ready(out_f32)
    assert out_f32.shape == (B, N, dim)
    assert jnp.allclose(out_f32, ref, atol=2e-3, rtol=2e-3), "Pallas fp32 output mismatch vs reference"

    # Default bf16 MXU-operand path (all generations incl. v5e): fp32 softmax + fp32 accumulation.
    out_bf16 = attention_pallas(x, w_qkv, w_proj, b_proj,
                                num_heads=num_heads, head_dim=head_dim,
                                grid_batches=gb, compute_dtype=jnp.bfloat16)
    out_bf16 = jax.block_until_ready(out_bf16)
    assert out_bf16.shape == (B, N, dim)
    assert jnp.allclose(out_bf16, ref, atol=7e-2, rtol=7e-2), "Pallas bf16 output mismatch vs reference"

    print("KERNEL_OK")
</pallas_src>

<mosaic_0001>
module attributes {stable_mosaic.version = 11 : i64} {
  func.func @_attention_kernel(%arg0: i32, %arg1: memref<32x64xf32, #tpu.memory_space<vmem>>, %arg2: memref<64x192xf32, #tpu.memory_space<vmem>>, %arg3: memref<64x64xf32, #tpu.memory_space<vmem>>, %arg4: memref<1x64xf32, #tpu.memory_space<vmem>>, %arg5: memref<64x64xf32, #tpu.memory_space<vmem>>, %arg6: memref<16x128xf32, #tpu.memory_space<vmem>>) attributes {dimension_semantics = [#tpu.dimension_semantics<parallel>], iteration_bounds = array<i64: 1>, scalar_prefetch = 0 : i64, scratch_operands = 0 : i64, tpu.core_type = #tpu.core_type<tc>, window_params = [{transform_indices = @transform_0, window_bounds = array<i64: 32, 64>}, {pipeline_mode = #tpu.pipeline_mode<synchronous>, transform_indices = @transform_1, window_bounds = array<i64: 64, 192>}, {pipeline_mode = #tpu.pipeline_mode<synchronous>, transform_indices = @transform_2, window_bounds = array<i64: 64, 64>}, {pipeline_mode = #tpu.pipeline_mode<synchronous>, transform_indices = @transform_3, window_bounds = array<i64: 1, 64>}, {pipeline_mode = #tpu.pipeline_mode<synchronous>, transform_indices = @transform_4, window_bounds = array<i64: 64, 64>}, {transform_indices = @transform_5, window_bounds = array<i64: 16, 128>}]} {
    %c0 = arith.constant 0 : index
    %c0_0 = arith.constant 0 : index
    %0 = vector.load %arg1[%c0, %c0_0] : memref<32x64xf32, #tpu.memory_space<vmem>>, vector<32x64xf32>
    %c0_1 = arith.constant 0 : index
    %c0_2 = arith.constant 0 : index
    %1 = vector.load %arg2[%c0_1, %c0_2] : memref<64x192xf32, #tpu.memory_space<vmem>>, vector<64x192xf32>
    %cst = arith.constant dense<0.000000e+00> : vector<32x192xf32>
    %2 = tpu.matmul %0, %1, %cst {dimension_numbers = #tpu.dot_dimension_numbers<[1], [0], [0], [1], [0, 0, 1, 1], [], []>} : vector<32x64xf32>, vector<64x192xf32>, vector<32x192xf32> -> vector<32x192xf32>
    %3 = vector.extract_strided_slice %2 {offsets = [0, 0], sizes = [32, 32], strides = [1, 1]} : vector<32x192xf32> to vector<32x32xf32>
    %4 = vector.extract_strided_slice %2 {offsets = [0, 32], sizes = [32, 32], strides = [1, 1]} : vector<32x192xf32> to vector<32x32xf32>
    %5 = tpu.concatenate %3, %4 in 0 : vector<32x32xf32>, vector<32x32xf32> -> vector<64x32xf32>
    %6 = vector.extract_strided_slice %2 {offsets = [0, 64], sizes = [32, 32], strides = [1, 1]} : vector<32x192xf32> to vector<32x32xf32>
    %7 = vector.extract_strided_slice %2 {offsets = [0, 96], sizes = [32, 32], strides = [1, 1]} : vector<32x192xf32> to vector<32x32xf32>
    %8 = tpu.concatenate %6, %7 in 0 : vector<32x32xf32>, vector<32x32xf32> -> vector<64x32xf32>
    %9 = vector.extract_strided_slice %2 {offsets = [0, 128], sizes = [32, 32], strides = [1, 1]} : vector<32x192xf32> to vector<32x32xf32>
    %10 = vector.extract_strided_slice %2 {offsets = [0, 160], sizes = [32, 32], strides = [1, 1]} : vector<32x192xf32> to vector<32x32xf32>
    %11 = tpu.concatenate %9, %10 in 0 : vector<32x32xf32>, vector<32x32xf32> -> vector<64x32xf32>
    %cst_3 = arith.constant dense<0.000000e+00> : vector<64x64xf32>
    %12 = tpu.matmul %5, %8, %cst_3 {dimension_numbers = #tpu.dot_dimension_numbers<[1], [1], [0], [0], [0, 0, 1, 0], [], []>} : vector<64x32xf32>, vector<64x32xf32>, vector<64x64xf32> -> vector<64x64xf32>
    %c0_4 = arith.constant 0 : index
    %c0_5 = arith.constant 0 : index
    %13 = vector.load %arg5[%c0_4, %c0_5] : memref<64x64xf32, #tpu.memory_space<vmem>>, vector<64x64xf32>
    %14 = arith.addf %12, %13 : vector<64x64xf32>
    %cst_6 = arith.constant dense<0xFF800000> : vector<64xf32>
    %15 = vector.multi_reduction <maximumf>, %14, %cst_6 [1] : vector<64x64xf32> to vector<64xf32>
    %16 = vector.shape_cast %15 : vector<64xf32> to vector<64x1xf32>
    %17 = vector.broadcast %16 : vector<64x1xf32> to vector<64x64xf32>
    %18 = arith.subf %14, %17 : vector<64x64xf32>
    %19 = math.exp %18 : vector<64x64xf32>
    %cst_7 = arith.constant dense<0.000000e+00> : vector<64xf32>
    %20 = vector.multi_reduction <add>, %19, %cst_7 [1] : vector<64x64xf32> to vector<64xf32>
    %21 = vector.shape_cast %20 : vector<64xf32> to vector<64x1xf32>
    %cst_8 = arith.constant dense<0.000000e+00> : vector<64x32xf32>
    %22 = tpu.matmul %19, %11, %cst_8 {dimension_numbers = #tpu.dot_dimension_numbers<[1], [0], [0], [1], [0, 0, 1, 1], [], []>} : vector<64x64xf32>, vector<64x32xf32>, vector<64x32xf32> -> vector<64x32xf32>
    %23 = tpu.reciprocal %21 : vector<64x1xf32> -> vector<64x1xf32>
    %24 = vector.broadcast %23 : vector<64x1xf32> to vector<64x32xf32>
    %25 = arith.mulf %22, %24 : vector<64x32xf32>
    %26 = vector.extract_strided_slice %25 {offsets = [0, 0], sizes = [32, 32], strides = [1, 1]} : vector<64x32xf32> to vector<32x32xf32>
    %27 = vector.extract_strided_slice %25 {offsets = [32, 0], sizes = [32, 32], strides = [1, 1]} : vector<64x32xf32> to vector<32x32xf32>
    %28 = tpu.concatenate %26, %27 in 1 : vector<32x32xf32>, vector<32x32xf32> -> vector<32x64xf32>
    %c0_9 = arith.constant 0 : index
    %c0_10 = arith.constant 0 : index
    %29 = vector.load %arg3[%c0_9, %c0_10] : memref<64x64xf32, #tpu.memory_space<vmem>>, vector<64x64xf32>
    %cst_11 = arith.constant dense<0.000000e+00> : vector<32x64xf32>
    %30 = tpu.matmul %28, %29, %cst_11 {dimension_numbers = #tpu.dot_dimension_numbers<[1], [0], [0], [1], [0, 0, 1, 1], [], []>} : vector<32x64xf32>, vector<64x64xf32>, vector<32x64xf32> -> vector<32x64xf32>
    %c0_12 = arith.constant 0 : index
    %c0_13 = arith.constant 0 : index
    %31 = vector.load %arg4[%c0_12, %c0_13] : memref<1x64xf32, #tpu.memory_space<vmem>>, vector<1x64xf32>
    %32 = vector.broadcast %31 : vector<1x64xf32> to vector<32x64xf32>
    %33 = arith.addf %30, %32 : vector<32x64xf32>
    %34 = vector.extract_strided_slice %33 {offsets = [0, 0], sizes = [16, 64], strides = [1, 1]} : vector<32x64xf32> to vector<16x64xf32>
    %35 = vector.extract_strided_slice %33 {offsets = [16, 0], sizes = [16, 64], strides = [1, 1]} : vector<32x64xf32> to vector<16x64xf32>
    %36 = tpu.concatenate %34, %35 in 1 : vector<16x64xf32>, vector<16x64xf32> -> vector<16x128xf32>
    %c0_14 = arith.constant 0 : index
    %c0_15 = arith.constant 0 : index
    %37 = vector.load %arg6[%c0_14, %c0_15] : memref<16x128xf32, #tpu.memory_space<vmem>>, vector<16x128xf32>
    tpu.vector_store %arg6[%c0_14, %c0_15], %36 {strides = array<i32>} : memref<16x128xf32, #tpu.memory_space<vmem>>, vector<16x128xf32>,
    return
  }
  func.func @transform_0(%arg0: i32) -> (i32, i32) {
    %c0_i32 = arith.constant 0 : i32
    %c0_i32_0 = arith.constant 0 : i32
    return %arg0, %c0_i32 : i32, i32
  }
  func.func @transform_1(%arg0: i32) -> (i32, i32) {
    %c0_i32 = arith.constant 0 : i32
    %c0_i32_0 = arith.constant 0 : i32
    %c0_i32_1 = arith.constant 0 : i32
    return %c0_i32, %c0_i32_0 : i32, i32
  }
  func.func @transform_2(%arg0: i32) -> (i32, i32) {
    %c0_i32 = arith.constant 0 : i32
    %c0_i32_0 = arith.constant 0 : i32
    %c0_i32_1 = arith.constant 0 : i32
    return %c0_i32, %c0_i32_0 : i32, i32
  }
  func.func @transform_3(%arg0: i32) -> (i32, i32) {
    %c0_i32 = arith.constant 0 : i32
    %c0_i32_0 = arith.constant 0 : i32
    %c0_i32_1 = arith.constant 0 : i32
    return %c0_i32, %c0_i32_0 : i32, i32
  }
  func.func @transform_4(%arg0: i32) -> (i32, i32) {
    %c0_i32 = arith.constant 0 : i32
    %c0_i32_0 = arith.constant 0 : i32
    %c0_i32_1 = arith.constant 0 : i32
    return %c0_i32, %c0_i32_0 : i32, i32
  }
  func.func @transform_5(%arg0: i32) -> (i32, i32) {
    %c0_i32 = arith.constant 0 : i32
    %c0_i32_0 = arith.constant 0 : i32
    return %arg0, %c0_i32 : i32, i32
  }
}

</mosaic_0001>

<bundles_post_ra>
// kernel: tpu_custom_call.1
= control target key start
LH: loop header
LB: loop body
LE: loop exit
PB: predicated region body
PF: predicated region fallthrough
CT: control target
= control target key end

     0   :  { %10 = vsyncpa [#allocation3], 0  ;;  %s1281_s0 = inlined_call_operand.hbm [shape: f32[32,64], index: 0, kind: input, shape index: {}]   ;;  %s1282_s1 = inlined_call_operand.hbm [shape: f32[64,192], index: 1, kind: input, shape index: {}]   ;;  %s1283_s2 = inlined_call_operand.hbm [shape: f32[64,64], index: 2, kind: input, shape index: {}]   ;;  %s1284_s3 = inlined_call_operand.vmem [shape: f32[1,64], index: 3, kind: input, shape index: {}]   ;;  %s1285_s4 = inlined_call_operand.hbm [shape: f32[64,64], index: 4, kind: input, shape index: {}]   ;;  %s1286_s5 = inlined_call_operand.hbm [shape: f32[16,128], index: 5, kind: output, shape index: {}]  }
   0x1   :  { %11 = vsyncpa [#allocation6], 0 }
   0x2   :  { %12 = vsyncpa [#allocation9], 0 }
   0x3   :  { %13 = vsyncpa [#allocation4], 0  ;;  %s1092_s18 = smov [#allocation5]  }
   0x4   :  { %s31_s19 = sshll.u32 %s1092_s18, 4  ;;  %s32_s19 = int_to_ptr.vmem [resolvable:$true] %s31_s19 }
   0x5   :  { %s992_s20 = scalar_lea.vmem %s32_s19, 2048  ;;  %p997_p1 = scmp.lt.s32.totalorder %s32_s19, %s32_s19 }
   0x6   :  { %p993_p0 = scmp.ne.s32.totalorder %s32_s19, %s992_s20  ;;  %p998_p2 = scmp.lt.s32.totalorder %s992_s20, %s992_s20 }
   0x8   :  { %p999_p3 = por %p998_p2, %p997_p1 }
   0xa   :  { %p1000_p4 = pnand %p999_p3, %p993_p0 }
   0xc   :  { %1003 = shalt.err (!%p1000_p4)
}
   0xd   :  { %s1093_s21 = smov 256   ;;  %s1094_s22 = smov 16  }
   0xe   :  { %37 = dma.hbm_to_vmem [thread:$0]  %s1282_s1, 2048, %s32_s19, [#allocation6], %s1093_s21, %s1093_s21, %s1094_s22  }
   0xf   :  { %s1095_s25 = smov [#allocation2]  }
  0x10   :  { %s19_s26 = sshll.u32 %s1095_s25, 4  ;;  %s20_s26 = int_to_ptr.vmem [resolvable:$true] %s19_s26 }
  0x11   :  { %s1012_s27 = scalar_lea.vmem %s20_s26, 512  ;;  %p1017_p6 = scmp.lt.s32.totalorder %s20_s26, %s20_s26 }
  0x12   :  { %p1013_p5 = scmp.ne.s32.totalorder %s20_s26, %s1012_s27  ;;  %p1018_p7 = scmp.lt.s32.totalorder %s1012_s27, %s1012_s27 }
  0x14   :  { %p1019_p8 = por %p1018_p7, %p1017_p6 }
  0x16   :  { %p1020_p9 = pnand %p1019_p8, %p1013_p5 }
  0x18   :  { %1023 = shalt.err (!%p1020_p9)
}
  0x19   :  { %s1096_s28 = smov 128   ;;  %s1097_s29 = smov 8  }
  0x1a   :  { %25 = dma.hbm_to_vmem [thread:$0]  %s1281_s0, 512, %s20_s26, [#allocation3], %s1096_s28, %s1096_s28, %s1097_s29  }
  0x1b   :  { %s1098_s1 = smov [#allocation7]   ;;  %s1099_s8 = smov [#allocation8]  }
  0x1c   :  { %s43_s7 = sshll.u32 %s1098_s1, 4  ;;  %s57_s9 = sshll.u32 %s1099_s8, 4  ;;  %s44_s7 = int_to_ptr.vmem [resolvable:$true] %s43_s7  ;;  %s58_s9 = int_to_ptr.vmem [resolvable:$true] %s57_s9 }
  0x1d   :  { %s1032_s10 = scalar_lea.vmem %s44_s7, 1024  ;;  %p1037_p11 = scmp.lt.s32.totalorder %s44_s7, %s44_s7 }
  0x1e   :  { %p1033_p10 = scmp.ne.s32.totalorder %s44_s7, %s1032_s10  ;;  %p1038_p12 = scmp.lt.s32.totalorder %s1032_s10, %s1032_s10 }
  0x20   :  { %p1039_p13 = por %p1038_p12, %p1037_p11 }
  0x22   :  { %p1040_p0 = pnand %p1039_p13, %p1033_p10 }
  0x24   :  { %1043 = shalt.err (!%p1040_p0)
}
  0x25   :  { %49 = dma.hbm_to_vmem [thread:$0]  %s1283_s2, 1024, %s44_s7, [#allocation6], %s1096_s28, %s1096_s28, %s1097_s29  }
  0x26   :  { %s1052_s0 = scalar_lea.vmem %s58_s9, 1024  ;;  %p1057_p2 = scmp.lt.s32.totalorder %s58_s9, %s58_s9 }
  0x27   :  { %p1053_p1 = scmp.ne.s32.totalorder %s58_s9, %s1052_s0  ;;  %p1058_p3 = scmp.lt.s32.totalorder %s1052_s0, %s1052_s0 }
  0x29   :  { %p1059_p4 = por %p1058_p3, %p1057_p2 }
  0x2b   :  { %p1060_p5 = pnand %p1059_p4, %p1053_p1 }
  0x2d   :  { %1063 = shalt.err (!%p1060_p5)
}
  0x2e   :  { %63 = dma.hbm_to_vmem [thread:$0]  %s1285_s4, 1024, %s58_s9, [#allocation9], %s1096_s28, %s1096_s28, %s1097_s29  }
  0x2f   :  { %1084 = dma.done.wait [#allocation3], 512  }
  0x30   :  { %1085 = vsyncadd [#allocation3], 4294966784 }
  0x31   :  { %1086 = dma.done.wait [#allocation6], 3072  }
  0x32   :  { %1087 = vsyncadd [#allocation6], 4294964224 }
  0x33   :  { %1088 = dma.done.wait [#allocation9], 1024  }
  0x34   :  { %1089 = vsyncadd [#allocation9], 4294966272  ;;  %v1100_v0 = vmov 0.0   ;;  %v95_v1 = vld [vmem:[#allocation5 + $0x78] sm:$0xff]  ;;  %v94_v2 = vld [vmem:[#allocation5 + $0x70] sm:$0xff]  ;;  %vm96_vm0 = vcmask 523264  }
  0x35   :  { %173 = vmatprep.mubr.f32.mxu0 %v1100_v0  ;;  %v93_v3 = vld [vmem:[#allocation5 + $0x68] sm:$0xff]  ;;  %125 = vmatprep.subr.mxu0 %v95_v1  ;;  %v92_v4 = vld [vmem:[#allocation5 + $0x60] sm:$0xff]  ;;  %v91_v5 = vld [vmem:[#allocation5 + $0x58] sm:$0xff]  ;;  %vm250_vm1 = vcmask 261120   ;;  %s1101_s2 = smov 96   ;;  %s1102_s4 = smov 64  }
  0x36   :  { %126 = vmatpush1.msra.mxu0 %v94_v2  ;;  %v90_v6 = vld [vmem:[#allocation5 + $0x50] sm:$0xff]  ;;  %v89_v7 = vld [vmem:[#allocation5 + $0x48] sm:$0xff]  ;;  %v88_v8 = vld [vmem:[#allocation5 + $0x40] sm:$0xff]  ;;  %s1103_s15 = smov 32   ;;  %s1104_s18 = smov [#allocation10]  }
  0x37   :  { %127 = vmatprep.subr.mxu0 %v93_v3  ;;  %v87_v9 = vld [vmem:[#allocation5 + $0x38] sm:$0xff]  ;;  %v86_v10 = vld [vmem:[#allocation5 + $0x30] sm:$0xff]  ;;  %v85_v11 = vld [vmem:[#allocation5 + $0x28] sm:$0xff]  ;;  %s754_s19 = sshll.u32 %s1104_s18, 4  ;;  %s755_s19 = int_to_ptr.vmem [resolvable:$true] %s754_s19 }
  0x38   :  { %128 = vmatpush1.msra.mxu0 %v92_v4  ;;  %v84_v12 = vld [vmem:[#allocation5 + $0x20] sm:$0xff]  ;;  %v83_v13 = vld [vmem:[#allocation5 + $0x18] sm:$0xff]  ;;  %v82_v14 = vld [vmem:[#allocation5 + $0x10] sm:$0xff]  ;;  %p1069_p7 = scmp.lt.s32.totalorder %s755_s19, %s755_s19 }
  0x39   :  { %129 = vmatprep.subr.mxu0 %v91_v5  ;;  %v81_v15 = vld [vmem:[#allocation5 + $0x8] sm:$0xff]  ;;  %v80_v16 = vld [vmem:[#allocation5] sm:$0xff]  ;;  %v78_v19 = vld [vmem:[#allocation2 + $0x10] sm:$0xff] }
  0x3a   :  { %130 = vmatpush1.msra.mxu0 %v90_v6  ;;  %v76_v17 = vld [vmem:[#allocation2] sm:$0xff]  ;;  %v77_v18 = vld [vmem:[#allocation2 + $0x8] sm:$0xff]  ;;  %v79_v20 = vld [vmem:[#allocation2 + $0x18] sm:$0xff] }
  0x3b   :  { %131 = vmatprep.subr.mxu0 %v89_v7  ;;  %v227_v42 = vld [vmem:[#allocation8 + $0x8] sm:$0xff]  ;;  %v226_v44 = vld [vmem:[#allocation8] sm:$0xff]  ;;  %v229_v47 = vld [vmem:[#allocation8 + $0x18] sm:$0xff] }
  0x3c   :  { %132 = vmatpush1.msra.mxu0 %v88_v8  ;;  %v228_v54 = vld [vmem:[#allocation8 + $0x10] sm:$0xff]  ;;  %v230_v56 = vld [vmem:[#allocation8 + $0x20] sm:$0xff]  ;;  %v231_v59 = vld [vmem:[#allocation8 + $0x28] sm:$0xff] }
  0x3d   :  { %133 = vmatprep.subr.mxu0 %v87_v9  ;;  %v233_v1 = vld [vmem:[#allocation8 + $0x38] sm:$0xff]  ;;  %v232_v7 = vld [vmem:[#allocation8 + $0x30] sm:$0xff] }
  0x3e   :  { %134 = vmatpush1.msra.mxu0 %v86_v10 }
  0x3f   :  { %135 = vmatprep.subr.mxu0 %v85_v11 }
  0x40   :  { %136 = vmatpush1.msra.mxu0 %v84_v12 }
  0x41   :  { %137 = vmatprep.subr.mxu0 %v83_v13 }
  0x42   :  { %138 = vmatpush1.msra.mxu0 %v82_v14 }
  0x43   :  { %139 = vmatprep.subr.mxu0 %v81_v15 }
  0x44   :  { %140 = vmatpush1.msra.mxu0 %v80_v16 }
  0x45   :  { %768 = vmatmul.mubr.msk.f32.vlgmr.msra.gmra.mxu0 %vm96_vm0, %v76_v17 }
  0x46   :  { %179 = vmatprep.mubr.f32.mxu0 %v1100_v0 }
  0x49   :  { %769 = vmatmul.mubr.msk.f32.gmra.mxu0 %vm96_vm0, %v77_v18 }
  0x4a   :  { %185 = vmatprep.mubr.f32.mxu0 %v1100_v0 }
  0x4d   :  { %770 = vmatmul.mubr.msk.f32.gmra.mxu0 %vm96_vm0, %v78_v19 }
  0x4e   :  { %191 = vmatprep.mubr.f32.mxu0 %v1100_v0 }
  0x51   :  { %771 = vmatmul.mubr.msk.f32.gmra.mxu0 %vm96_vm0, %v79_v20 }
 0x105   :  { %v175_v21 = vpop.f32.mrf.mxu0 }
 0x106   :  { %861 = vmatprep.mubr.msk.f32.mxu1 %vm250_vm1, %v175_v21 }
 0x107   :  { %v1161_v22 = vpop.f32.mrf.mxu0 }
 0x109   :  { %v181_v23 = vpop.f32.mrf.mxu0 }
 0x10a   :  { %204 = vrot.lane.b32.xlu1 %v181_v23, %s1101_s2 }
 0x10b   :  { %v1164_v24 = vpop.f32.mrf.mxu0 }
 0x10d   :  { %v187_v25 = vpop.f32.mrf.mxu0 }
 0x10e   :  { %202 = vrot.lane.b32.xlu1 %v175_v21, %s1101_s2 }
 0x10f   :  { %v1167_v26 = vpop.f32.mrf.mxu0 }
 0x111   :  { %v193_v27 = vpop.f32.mrf.mxu0 }
 0x112   :  { %208 = vrot.lane.b32.xlu0 %v193_v27, %s1101_s2 }
 0x113   :  { %v1179_v32 = vpop.f32.mrf.mxu0 }
 0x116   :  { %206 = vrot.lane.b32.xlu0 %v187_v25, %s1101_s2 }
 0x17c   :  { %v205_v29 = vpop.permute.xlu1 %204 }
 0x180   :  { %v203_v31 = vpop.permute.xlu1 %202 }
 0x184   :  { %v209_v28 = vpop.permute.xlu0 %208 }
 0x185   :  { %248 = vrot.lane.b32.xlu0 %v209_v28, %s1102_s4 }
 0x188   :  { %v207_v30 = vpop.permute.xlu0 %206 }
 0x189   :  { %244 = vrot.lane.b32.xlu0 %v205_v29, %s1102_s4  ;;  %246 = vrot.lane.b32.xlu1 %v207_v30, %s1102_s4 }
 0x18d   :  { %240 = vrot.lane.b32.xlu0 %v193_v27, %s1102_s4  ;;  %242 = vrot.lane.b32.xlu1 %v203_v31, %s1102_s4 }
 0x191   :  { %236 = vrot.lane.b32.xlu0 %v181_v23, %s1102_s4  ;;  %238 = vrot.lane.b32.xlu1 %v187_v25, %s1102_s4 }
 0x195   :  { %234 = vrot.lane.b32.xlu1 %v175_v21, %s1102_s4 }
 0x199   :  { %220 = vrot.lane.b32.xlu1 %v1179_v32, %s1101_s2 }
 0x1f7   :  { %v249_v33 = vpop.permute.xlu0 %248 }
 0x1f8   :  { %845 = vmatprep.subr.msk.mxu1 %vm250_vm1, %v249_v33 }
 0x1f9   :  { %846 = vmatpush3.xpose.msk.msra.mxu1 %vm250_vm1, %v249_v33 }
 0x1fb   :  { %v247_v34 = vpop.permute.xlu1 %246  ;;  %v245_v35 = vpop.permute.xlu0 %244 }
 0x1fc   :  { %847 = vmatprep.subr.msk.mxu1 %vm250_vm1, %v247_v34 }
 0x1fd   :  { %848 = vmatpush3.xpose.msk.msra.mxu1 %vm250_vm1, %v247_v34 }
 0x1fe   :  { %849 = vmatprep.subr.msk.mxu1 %vm250_vm1, %v245_v35 }
 0x1ff   :  { %v243_v36 = vpop.permute.xlu1 %242  ;;  %v241_v38 = vpop.permute.xlu0 %240 }
 0x201   :  { %850 = vmatpush3.xpose.msk.msra.mxu1 %vm250_vm1, %v245_v35 }
 0x202   :  { %851 = vmatprep.subr.msk.mxu1 %vm250_vm1, %v243_v36 }
 0x203   :  { %v239_v37 = vpop.permute.xlu1 %238  ;;  %v237_v41 = vpop.permute.xlu0 %236 }
 0x205   :  { %852 = vmatpush3.xpose.msk.msra.mxu1 %vm250_vm1, %v243_v36 }
 0x206   :  { %853 = vmatprep.subr.msk.mxu1 %vm250_vm1, %v241_v38 }
 0x207   :  { %v235_v39 = vpop.permute.xlu1 %234 }
 0x209   :  { %854 = vmatpush3.xpose.msk.msra.mxu1 %vm250_vm1, %v241_v38 }
 0x20a   :  { %855 = vmatprep.subr.msk.mxu1 %vm250_vm1, %v239_v37 }
 0x20b   :  { %v221_v40 = vpop.permute.xlu1 %220 }
 0x20c   :  { %873 = vmatprep.subr.mxu0 %v221_v40 }
 0x20d   :  { %856 = vmatpush3.xpose.msk.msra.mxu1 %vm250_vm1, %v239_v37  ;;  %874 = vmatpush3.msra.mxu0 %v221_v40 }
 0x20e   :  { %857 = vmatprep.subr.msk.mxu1 %vm250_vm1, %v237_v41 }
 0x211   :  { %858 = vmatpush3.xpose.msk.msra.mxu1 %vm250_vm1, %v237_v41 }
 0x212   :  { %859 = vmatprep.subr.msk.mxu1 %vm250_vm1, %v235_v39 }
 0x215   :  { %860 = vmatpush3.xpose.msk.msra.mxu1 %vm250_vm1, %v235_v39 }
 0x218   :  { %862 = vmatmul.mubr.msk.f32.vlgmr.msra.gmra.mxu1 %vm250_vm1, %v181_v23 }
 0x219   :  { %864 = vmatprep.mubr.msk.f32.mxu1 %vm250_vm1, %v187_v25 }
 0x21c   :  { %865 = vmatmul.mubr.msk.f32.gmra.mxu1 %vm250_vm1, %v193_v27 }
 0x21d   :  { %867 = vmatprep.mubr.msk.f32.mxu1 %vm250_vm1, %v203_v31 }
 0x220   :  { %868 = vmatmul.mubr.msk.f32.gmra.mxu1 %vm250_vm1, %v205_v29 }
 0x221   :  { %870 = vmatprep.mubr.msk.f32.mxu1 %vm250_vm1, %v207_v30 }
 0x224   :  { %871 = vmatmul.mubr.msk.f32.gmra.mxu1 %vm250_vm1, %v209_v28 }
 0x2d8   :  { %v863_v43 = vpop.f32.mrf.mxu1 }
 0x2d9   :  { %v1206_v45 = vadd.f32 %v863_v43, %v227_v42 }
 0x2da   :  { %v349_v46 = vpop.f32.mrf.mxu1 }
 0x2db   :  { %v350_v48 = vadd.f32 %v349_v46, %v226_v44  ;;  %v391_v49 = vsel %vm96_vm0, %v1206_v45, -inf }
 0x2dc   :  { %v866_v50 = vpop.f32.mrf.mxu1  ;;  %392 = vmax.xlane.f32.xlu1 %v391_v49 }
 0x2dd   :  { %v365_v51 = vadd.f32 %v866_v50, %v229_v47  ;;  %v388_v52 = vsel %vm96_vm0, %v350_v48, -inf }
 0x2de   :  { %v359_v53 = vpop.f32.mrf.mxu1  ;;  %389 = vmax.xlane.f32.xlu0 %v388_v52  ;;  %v631_v52 = vld [vmem:[#allocation7 + $0x30] sm:$0xff] }
 0x2df   :  { %v360_v57 = vadd.f32 %v359_v53, %v228_v54  ;;  %v397_v58 = vsel %vm96_vm0, %v365_v51, -inf  ;;  %v630_v53 = vld [vmem:[#allocation7 + $0x28] sm:$0xff]  ;;  %v629_v54 = vld [vmem:[#allocation7 + $0x20] sm:$0xff] }
 0x2e0   :  { %v869_v55 = vpop.f32.mrf.mxu1 }
 0x2e1   :  { %v1212_v62 = vadd.f32 %v869_v55, %v231_v59  ;;  %v394_v63 = vsel %vm96_vm0, %v360_v57, -inf  ;;  %v628_v55 = vld [vmem:[#allocation7 + $0x18] sm:$0xff] }
 0x2e2   :  { %v369_v60 = vpop.f32.mrf.mxu1  ;;  %398 = vmax.xlane.f32.xlu0 %v397_v58 }
 0x2e3   :  { %v370_v61 = vadd.f32 %v369_v60, %v230_v56  ;;  %v403_v4 = vsel %vm96_vm0, %v1212_v62, -inf  ;;  %v627_v56 = vld [vmem:[#allocation7 + $0x10] sm:$0xff] }
 0x2e4   :  { %v872_v2 = vpop.f32.mrf.mxu1 }
 0x2e5   :  { %v400_v0 = vsel %vm96_vm0, %v370_v61, -inf  ;;  %v385_v3 = vadd.f32 %v872_v2, %v233_v1 }
 0x2e6   :  { %395 = vmax.xlane.f32.xlu0 %v394_v63  ;;  %401 = vmax.xlane.f32.xlu1 %v400_v0  ;;  %v379_v6 = vpop.f32.mrf.mxu1  ;;  %v625_v0 = vld [vmem:[#allocation7] sm:$0xff] }
 0x2e7   :  { %v409_v5 = vsel %vm96_vm0, %v385_v3, -inf  ;;  %v380_v8 = vadd.f32 %v379_v6, %v232_v7 }
 0x2e9   :  { %v406_v9 = vsel %vm96_vm0, %v380_v8, -inf }
 0x2ea   :  { %404 = vmax.xlane.f32.xlu0 %v403_v4 }
 0x2ee   :  { %410 = vmax.xlane.f32.xlu0 %v409_v5 }
 0x2f7   :  { %216 = vrot.lane.b32.xlu1 %v1164_v24, %s1101_s2 }
 0x304   :  { %218 = vrot.lane.b32.xlu0 %v1167_v26, %s1101_s2 }
 0x31b   :  { %407 = vmax.xlane.f32.xlu1 %v406_v9 }
 0x32c   :  { %214 = vrot.lane.b32.xlu1 %v1161_v22, %s1101_s2 }
 0x365   :  { %v393_v15 = vpop.xlane.xlu1 %392 }
 0x366   :  { %v413_v34 = vsub.f32 %v1206_v45, %v393_v15 }
 0x367   :  { %v390_v10 = vpop.xlane.xlu0 %389 }
 0x368   :  { %v412_v11 = vsub.f32 %v350_v48, %v390_v10  ;;  %v422_v36 = vmul.f32 1.442695, %v413_v34 }
 0x36a   :  { %v420_v12 = vmul.f32 1.442695, %v412_v11 }
 0x36b   :  { %v399_v13 = vpop.xlane.xlu0 %398 }
 0x36c   :  { %952 = vpow2.f32 %v420_v12  ;;  %v415_v17 = vsub.f32 %v365_v51, %v399_v13  ;;  %v632_v51 = vld [vmem:[#allocation7 + $0x38] sm:$0xff] }
 0x36d   :  { %923 = vmatprep.subr.mxu1 %v632_v51 }
 0x36e   :  { %v426_v23 = vmul.f32 1.442695, %v415_v17  ;;  %931 = vmatpush3.msra.mxu1 %v632_v51 }
 0x36f   :  { %v396_v14 = vpop.xlane.xlu0 %395  ;;  %v402_v18 = vpop.xlane.xlu1 %401  ;;  %924 = vmatprep.subr.mxu1 %v631_v52 }
 0x370   :  { %v414_v35 = vsub.f32 %v360_v57, %v396_v14  ;;  %v416_v38 = vsub.f32 %v370_v61, %v402_v18  ;;  %932 = vmatpush3.msra.mxu1 %v631_v52 }
 0x371   :  { %925 = vmatprep.subr.mxu1 %v630_v53 }
 0x372   :  { %v424_v37 = vmul.f32 1.442695, %v414_v35  ;;  %v428_v42 = vmul.f32 1.442695, %v416_v38  ;;  %933 = vmatpush3.msra.mxu1 %v630_v53 }
 0x373   :  { %v405_v16 = vpop.xlane.xlu0 %404  ;;  %v217_v28 = vpop.permute.xlu1 %216  ;;  %926 = vmatprep.subr.mxu1 %v629_v54 }
 0x374   :  { %v417_v40 = vsub.f32 %v1212_v62, %v405_v16  ;;  %934 = vmatpush3.msra.mxu1 %v629_v54  ;;  %v626_v62 = vld [vmem:[#allocation7 + $0x8] sm:$0xff] }
 0x375   :  { %927 = vmatprep.subr.mxu1 %v628_v55 }
 0x376   :  { %v430_v46 = vmul.f32 1.442695, %v417_v40  ;;  %935 = vmatpush3.msra.mxu1 %v628_v55 }
 0x377   :  { %v411_v19 = vpop.xlane.xlu0 %410  ;;  %928 = vmatprep.subr.mxu1 %v627_v56 }
 0x378   :  { %v419_v20 = vsub.f32 %v385_v3, %v411_v19  ;;  %936 = vmatpush3.msra.mxu1 %v627_v56 }
 0x379   :  { %v1226_v21 = vpop.eup %952  ;;  %929 = vmatprep.subr.mxu1 %v626_v62 }
 0x37a   :  { %v434_v25 = vmul.f32 1.442695, %v419_v20  ;;  %889 = vmatprep.mubr.msk.f32.mxu0 %vm96_vm0, %v1226_v21  ;;  %937 = vmatpush3.msra.mxu1 %v626_v62  ;;  %v436_v15 = vsel %vm96_vm0, %v1226_v21, 0.0 }
 0x37b   :  { %v219_v27 = vpop.permute.xlu0 %218  ;;  %930 = vmatprep.subr.mxu1 %v625_v0 }
 0x37c   :  { %954 = vpow2.f32 %v434_v25  ;;  %875 = vmatprep.subr.mxu0 %v219_v27  ;;  %938 = vmatpush3.msra.mxu1 %v625_v0 }
 0x37d   :  { %876 = vmatpush3.msra.mxu0 %v219_v27  ;;  %956 = vpow2.f32 %v426_v23 }
 0x37e   :  { %877 = vmatprep.subr.mxu0 %v217_v28  ;;  %958 = vpow2.f32 %v422_v36 }
 0x37f   :  { %878 = vmatpush3.msra.mxu0 %v217_v28  ;;  %960 = vpow2.f32 %v424_v37 }
 0x389   :  { %v955_v29 = vpop.eup %954 }
 0x38a   :  { %v457_v30 = vsel %vm96_vm0, %v955_v29, 0.0  ;;  %v957_v31 = vpop.eup %956 }
 0x38b   :  { %458 = vadd.xlane.f32.xlu1 %v457_v30  ;;  %v445_v33 = vsel %vm96_vm0, %v957_v31, 0.0  ;;  %v1241_v45 = vpop.eup %958 }
 0x38c   :  { %v961_v47 = vpop.eup %960  ;;  %v439_v13 = vsel %vm96_vm0, %v1241_v45, 0.0 }
 0x38f   :  { %446 = vadd.xlane.f32.xlu1 %v445_v33 }
 0x3a4   :  { %v408_v39 = vpop.xlane.xlu1 %407 }
 0x3a5   :  { %v418_v41 = vsub.f32 %v380_v8, %v408_v39 }
 0x3a7   :  { %v432_v43 = vmul.f32 1.442695, %v418_v41 }
 0x3a8   :  { %v215_v44 = vpop.permute.xlu1 %214 }
 0x3a9   :  { %962 = vpow2.f32 %v432_v43  ;;  %879 = vmatprep.subr.mxu0 %v215_v44 }
 0x3aa   :  { %964 = vpow2.f32 %v428_v42  ;;  %880 = vmatpush3.msra.mxu0 %v215_v44  ;;  %v796_v42 = vld [vmem:[%s1284_s3] ss:$0 sm:$0xff]  ;;  %s1064_s3 = scalar_lea.vmem %s755_s19, 256 }
 0x3ab   :  { %881 = vmatprep.subr.mxu0 %v1179_v32  ;;  %966 = vpow2.f32 %v430_v46  ;;  %p1065_p6 = scmp.ne.s32.totalorder %s755_s19, %s1064_s3  ;;  %p1070_p8 = scmp.lt.s32.totalorder %s1064_s3, %s1064_s3 }
 0x3ac   :  { %882 = vmatpush3.msra.mxu0 %v1179_v32 }
 0x3ad   :  { %883 = vmatprep.subr.mxu0 %v1167_v26  ;;  %p1071_p9 = por %p1070_p8, %p1069_p7 }
 0x3ae   :  { %884 = vmatpush3.msra.mxu0 %v1167_v26 }
 0x3af   :  { %885 = vmatprep.subr.mxu0 %v1164_v24  ;;  %p1072_p10 = pnand %p1071_p9, %p1065_p6 }
 0x3b0   :  { %886 = vmatpush3.msra.mxu0 %v1164_v24 }
 0x3b1   :  { %887 = vmatprep.subr.mxu0 %v1161_v22 }
 0x3b2   :  { %888 = vmatpush3.msra.mxu0 %v1161_v22  ;;  %v442_v22 = vsel %vm96_vm0, %v961_v47, 0.0 }
 0x3b3   :  { %890 = vmatmul.mubr.msk.f32.vlgmr.msra.gmra.mxu0 %vm96_vm0, %v1241_v45  ;;  %901 = vmatprep.subr.mxu0 %v632_v51 }
 0x3b4   :  { %892 = vmatprep.mubr.msk.f32.mxu0 %vm96_vm0, %v961_v47  ;;  %902 = vmatpush3.msra.mxu0 %v632_v51 }
 0x3b5   :  { %903 = vmatprep.subr.mxu0 %v631_v52 }
 0x3b6   :  { %v963_v32 = vpop.eup %962  ;;  %904 = vmatpush3.msra.mxu0 %v631_v52 }
 0x3b7   :  { %v965_v48 = vpop.eup %964  ;;  %893 = vmatmul.mubr.msk.f32.gmra.mxu0 %vm96_vm0, %v957_v31  ;;  %v454_v26 = vsel %vm96_vm0, %v963_v32, 0.0  ;;  %905 = vmatprep.subr.mxu0 %v630_v53 }
 0x3b8   :  { %455 = vadd.xlane.f32.xlu0 %v454_v26  ;;  %895 = vmatprep.mubr.msk.f32.mxu0 %vm96_vm0, %v965_v48  ;;  %v967_v24 = vpop.eup %966  ;;  %v448_v49 = vsel %vm96_vm0, %v965_v48, 0.0 }
 0x3b9   :  { %v451_v50 = vsel %vm96_vm0, %v967_v24, 0.0  ;;  %906 = vmatpush3.msra.mxu0 %v630_v53 }
 0x3ba   :  { %907 = vmatprep.subr.mxu0 %v629_v54 }
 0x3bb   :  { %896 = vmatmul.mubr.msk.f32.gmra.mxu0 %vm96_vm0, %v967_v24 }
 0x3bc   :  { %443 = vadd.xlane.f32.xlu0 %v442_v22  ;;  %898 = vmatprep.mubr.msk.f32.mxu0 %vm96_vm0, %v963_v32 }
 0x3bd   :  { %908 = vmatpush3.msra.mxu0 %v629_v54 }
 0x3be   :  { %909 = vmatprep.subr.mxu0 %v628_v55 }
 0x3bf   :  { %899 = vmatmul.mubr.msk.f32.gmra.mxu0 %vm96_vm0, %v955_v29 }
 0x3c0   :  { %449 = vadd.xlane.f32.xlu0 %v448_v49  ;;  %910 = vmatpush3.msra.mxu0 %v628_v55 }
 0x3c1   :  { %911 = vmatprep.subr.mxu0 %v627_v56 }
 0x3c2   :  { %912 = vmatpush3.msra.mxu0 %v627_v56 }
 0x3c3   :  { %913 = vmatprep.subr.mxu0 %v626_v62 }
 0x3c4   :  { %452 = vadd.xlane.f32.xlu0 %v451_v50  ;;  %914 = vmatpush3.msra.mxu0 %v626_v62 }
 0x3c5   :  { %915 = vmatprep.subr.mxu0 %v625_v0 }
 0x3c6   :  { %916 = vmatpush3.msra.mxu0 %v625_v0 }
 0x414   :  { %v459_v59 = vpop.xlane.xlu1 %458 }
 0x418   :  { %v447_v20 = vpop.xlane.xlu1 %446 }
 0x441   :  { %v456_v57 = vpop.xlane.xlu0 %455 }
 0x445   :  { %v444_v58 = vpop.xlane.xlu0 %443 }
 0x446   :  { %968 = vrcp.f32 %v444_v58 }
 0x447   :  { %970 = vrcp.f32 %v459_v59 }
 0x448   :  { %972 = vrcp.f32 %v456_v57 }
 0x449   :  { %v450_v12 = vpop.xlane.xlu0 %449 }
 0x44d   :  { %v453_v14 = vpop.xlane.xlu0 %452 }
 0x44e   :  { %974 = vrcp.f32 %v453_v14 }
 0x44f   :  { %976 = vrcp.f32 %v450_v12 }
 0x450   :  { %978 = vrcp.f32 %v447_v20 }
 0x453   :  { %v969_v1 = vpop.eup %968 }
 0x454   :  { %v971_v6 = vpop.eup %970 }
 0x455   :  { %v973_v9 = vpop.eup %972 }
 0x45b   :  { %v975_v16 = vpop.eup %974 }
 0x45c   :  { %v977_v18 = vpop.eup %976 }
 0x45d   :  { %v979_v23 = vpop.eup %978 }
 0x473   :  { %v891_v60 = vpop.f32.mrf.mxu0 }
 0x475   :  { %v550_v61 = vpop.f32.mrf.mxu0 }
 0x477   :  { %v894_v63 = vpop.f32.mrf.mxu0 }
 0x478   :  { %v600_v27 = vmul.f32 %v979_v23, %v894_v63 }
 0x479   :  { %v560_v2 = vpop.f32.mrf.mxu0 }
 0x47a   :  { %v599_v3 = vmul.f32 %v969_v1, %v560_v2 }
 0x47b   :  { %v897_v4 = vpop.f32.mrf.mxu0 }
 0x47c   :  { %v602_v17 = vmul.f32 %v975_v16, %v897_v4 }
 0x47d   :  { %v570_v5 = vpop.f32.mrf.mxu0 }
 0x47e   :  { %v601_v19 = vmul.f32 %v977_v18, %v570_v5 }
 0x47f   :  { %v900_v7 = vpop.f32.mrf.mxu0 }
 0x480   :  { %v604_v8 = vmul.f32 %v971_v6, %v900_v7 }
 0x481   :  { %v580_v10 = vpop.f32.mrf.mxu0 }
 0x482   :  { %v603_v11 = vmul.f32 %v973_v9, %v580_v10  ;;  %615 = vrot.lane.b32.xlu0 %v604_v8, %s1103_s15 }
 0x484   :  { %613 = vrot.lane.b32.xlu1 %v603_v11, %s1103_s15 }
 0x4a1   :  { %440 = vadd.xlane.f32.xlu0 %v439_v13 }
 0x4a8   :  { %437 = vadd.xlane.f32.xlu1 %v436_v15 }
 0x4b7   :  { %611 = vrot.lane.b32.xlu0 %v602_v17, %s1103_s15 }
 0x4b9   :  { %609 = vrot.lane.b32.xlu1 %v601_v19, %s1103_s15 }
 0x4f4   :  { %v616_v25 = vpop.permute.xlu0 %615 }
 0x4f5   :  { %v624_v30 = vsel %vm250_vm1, %v600_v27, %v616_v25 }
 0x4f6   :  { %v614_v28 = vpop.permute.xlu1 %613 }
 0x4f7   :  { %v623_v29 = vsel %vm250_vm1, %v599_v3, %v614_v28 }
 0x4f8   :  { %920 = vmatprep.mubr.msk.f32.mxu1 %vm96_vm0, %v623_v29 }
 0x4f9   :  { %921 = vmatmul.mubr.msk.f32.vlgmr.msra.gmra.mxu1 %vm96_vm0, %v624_v30 }
 0x52a   :  { %v441_v21 = vpop.xlane.xlu0 %440 }
 0x52b   :  { %980 = vrcp.f32 %v441_v21 }
 0x52e   :  { %v612_v38 = vpop.permute.xlu0 %611 }
 0x531   :  { %v438_v31 = vpop.xlane.xlu1 %437 }
 0x532   :  { %982 = vrcp.f32 %v438_v31 }
 0x535   :  { %v610_v37 = vpop.permute.xlu1 %609 }
 0x538   :  { %v981_v33 = vpop.eup %980 }
 0x539   :  { %v598_v35 = vmul.f32 %v981_v33, %v891_v60 }
 0x53b   :  { %v622_v40 = vsel %vm250_vm1, %v598_v35, %v612_v38 }
 0x53f   :  { %v983_v34 = vpop.eup %982 }
 0x540   :  { %v597_v36 = vmul.f32 %v983_v34, %v550_v61 }
 0x542   :  { %v621_v39 = vsel %vm250_vm1, %v597_v36, %v610_v37 }
 0x543   :  { %917 = vmatprep.mubr.msk.f32.mxu0 %vm96_vm0, %v621_v39 }
 0x544   :  { %918 = vmatmul.mubr.msk.f32.vlgmr.msra.gmra.mxu0 %vm96_vm0, %v622_v40 }
 0x5b9   :  { %v922_v41 = vpop.f32.mrf.mxu1 }
 0x5ba   :  { %v734_v46 = vadd.f32 %v922_v41, %v796_v42 }
 0x5bb   :  { %v728_v43 = vpop.f32.mrf.mxu1 }
 0x5bc   :  { %v729_v44 = vadd.f32 %v796_v42, %v728_v43 }
 0x5be   :  { %739 = vrot.lane.b32.xlu1 %v729_v44, %s1102_s4 }
 0x5c2   :  { %741 = vrot.lane.b32.xlu1 %v734_v46, %s1102_s4 }
 0x604   :  { %v919_v45 = vpop.f32.mrf.mxu0 }
 0x605   :  { %v724_v24 = vadd.f32 %v919_v45, %v796_v42 }
 0x606   :  { %v718_v47 = vpop.f32.mrf.mxu0 }
 0x607   :  { %v719_v32 = vadd.f32 %v796_v42, %v718_v47 }
 0x630   :  { %v740_v48 = vpop.permute.xlu1 %739 }
 0x631   :  { %v745_v26 = vsel %vm96_vm0, %v719_v32, %v740_v48 }
 0x632   :  { %747 = vst [vmem:[#allocation10] sm:$0xff] %v745_v26 }
 0x634   :  { %v742_v22 = vpop.permute.xlu1 %741 }
 0x635   :  { %v746_v49 = vsel %vm96_vm0, %v724_v24, %v742_v22 }
 0x636   :  { %748 = vst [vmem:[#allocation10 + $0x8] sm:$0xff] %v746_v49 }
 0x637   :  { %1075 = shalt.err (!%p1072_p10)
}
 0x638   :  { %760 = dma.vmem_to_hbm [thread:$0]  %s755_s19, 256, %s1286_s5, [#allocation4], %s1096_s28, %s1096_s28, %s1097_s29  }
 0x639   :  { %1090 = dma.done.wait [#allocation4], 256  }
 0x63a   :  { %1091 = vsyncadd [#allocation4], 4294967040 }
 0x63b   :  { %764 = vsyncpa [#allocation3], 1 }
 0x63c   :  { %765 = vsyncpa [#allocation6], 1 }
 0x63d   :  { %766 = vsyncpa [#allocation9], 1 }
 0x63e   :  { %767 = vsyncpa [#allocation4], 1 }

</bundles_post_ra>
